<compile_context>
chip_gen: v6e
topology: v6e:2x2x1
jax: 0.10.0
libtpu: 0.0.40
codegen_flags: <defaults>
</compile_context>

<pallas_src>
import math

import jax
import jax.numpy as jnp
from jax.experimental import pallas as pl
from jax.experimental.pallas import tpu as pltpu


# ----------------------------- Pallas kernel --------------------------------

def _patch_conv_kernel(x_ref, w_ref, b_ref, o_ref):
    """One (batch b, row-tile i) grid step.

    x_ref: (TM, K)   f32   K = patch_size * c_in, flattened in (p, c) order
    w_ref: (K,  D)   bf16  columns permuted: column q*Dp + j holds channel j*P+q
    b_ref: (1,  D)   f32   same column permutation
    o_ref: (P, TM, Dp)     final layout: o[q, t, j] = conv[t, j*P + q] + bias
    """
    x = x_ref[...].astype(w_ref.dtype)          # in-VMEM cast: free VPU filler
    acc = jnp.dot(x, w_ref[...], preferred_element_type=jnp.float32)
    acc = acc + b_ref[...]
    P, _, Dp = o_ref.shape
    # Fused output permute: columns already ordered (q, j), so the epilogue is
    # P static lane-slices stored directly into the final (B, P, T, Dp) layout.
    for q in range(P):                          # static unroll, P is small
        o_ref[q, :, :] = acc[:, q * Dp:(q + 1) * Dp].astype(o_ref.dtype)


def _pick_row_tile(T, B, row_bytes, vmem_budget_bytes, min_grid_steps=4):
    """Largest divisor of T fitting the VMEM budget (no padding, no slicing).

    Prefers sublane-aligned tiles (multiple of 8, or full T) and keeps at least
    `min_grid_steps` total grid steps so v7x can split work across both TCs.
    """
    cap = max(1, vmem_budget_bytes // max(row_bytes, 1))
    divisors = [d for d in range(1, T + 1) if T % d == 0]

    def ok(d, need_steps):
        return (d <= cap
                and (d % 8 == 0 or d == T)
                and B * (T // d) >= need_steps)

    for need_steps in sorted({min_grid_steps, 2, 1}, reverse=True):
        cands = [d for d in divisors if ok(d, need_steps)]
        if cands:
            return max(cands)
    # Fallback: largest divisor under the cap (alignment handled by Mosaic).
    cands = [d for d in divisors if d <= cap]
    return max(cands) if cands else T


def _spatial_patch_emb_fwd(x, w_perm, bias_perm, patch_size, *,
                           out_dtype=jnp.float32,
                           vmem_budget_bytes=12 << 20):
    """(B, L, C) -> (B, L, d_model // patch_size), conv folded to one matmul."""
    B, L, C = x.shape
    P = patch_size
    K, D = w_perm.shape
    assert L % P == 0 and K == P * C and D % P == 0
    T = L // P
    Dp = D // P

    # (B, L, C) -> (B, T, P*C): contiguous view, no HBM copy / transpose.
    x3 = x.reshape(B, T, K)
    bias2d = bias_perm.reshape(1, D).astype(jnp.float32)

    out_bytes = jnp.dtype(out_dtype).itemsize
    # Double-buffered streaming VMEM per output row: f32 x tile + out tile.
    row_bytes = 2 * (K * x.dtype.itemsize + D * out_bytes)
    tm = _pick_row_tile(T, B, row_bytes, vmem_budget_bytes)
    grid = (B, T // tm)

    bytes_accessed = int(
        x3.size * x3.dtype.itemsize
        + w_perm.size * w_perm.dtype.itemsize
        + bias2d.size * 4
        + B * L * Dp * out_bytes)

    out4 = pl.pallas_call(
        _patch_conv_kernel,
        out_shape=jax.ShapeDtypeStruct((B, P, T, Dp), out_dtype),
        grid_spec=pltpu.PrefetchScalarGridSpec(
            num_scalar_prefetch=0,
            grid=grid,
            in_specs=[
                pl.BlockSpec((None, tm, K), lambda b, i: (b, i, 0)),  # streamed x
                pl.BlockSpec((K, D), lambda b, i: (0, 0)),            # resident W
                pl.BlockSpec((1, D), lambda b, i: (0, 0)),            # resident bias
            ],
            out_specs=pl.BlockSpec((None, P, tm, Dp),
                                   lambda b, i: (b, 0, i, 0)),
        ),
        compiler_params=pltpu.CompilerParams(
            dimension_semantics=("parallel", "parallel"),
        ),
        cost_estimate=pl.CostEstimate(
            flops=2 * B * T * K * D,
            transcendentals=0,
            bytes_accessed=bytes_accessed,
        ),
    )(x3, w_perm, bias2d)

    # (B, P, T, Dp) -> (B, L, Dp): P and T are adjacent, P*T = L -> free reshape.
    return out4.reshape(B, L, Dp)


# ------------------------------ Module in JAX --------------------------------

class SpatialPatchEmb:
    """JAX/Pallas port of the PyTorch SpatialPatchEmb module (inference).

    Precision (explicit choice): the matmul runs on the MXU in `compute_dtype`
    (bf16 by default) with f32 accumulation; `out_dtype` defaults to f32 to
    match PyTorch, pass bf16 to halve output HBM traffic.
    """

    def __init__(self, c_in, d_model, patch_size, key,
                 compute_dtype=jnp.bfloat16, out_dtype=jnp.float32,
                 vmem_budget_bytes=12 << 20):
        assert d_model % patch_size == 0
        self.c_in = c_in
        self.d_model = d_model
        self.patch_size = patch_size
        self.out_dtype = out_dtype
        self.vmem_budget_bytes = vmem_budget_bytes

        kw, kb = jax.random.split(key)
        fan_in = c_in * patch_size
        # kaiming_normal_(mode='fan_in', nonlinearity='leaky_relu'), a=0 -> gain=sqrt(2)
        std = math.sqrt(2.0) / math.sqrt(fan_in)
        # PyTorch Conv1d weight layout: (d_model, c_in, patch_size)
        self.weight = std * jax.random.normal(
            kw, (d_model, c_in, patch_size), dtype=jnp.float32)
        bound = 1.0 / math.sqrt(fan_in)
        self.bias = jax.random.uniform(
            kb, (d_model,), dtype=jnp.float32, minval=-bound, maxval=bound)

        Dp = d_model // patch_size
        # Fold the strided conv into a matmul with K flattened as (p, c) so the
        # activation only needs a reshape:  w_flat[p*C + c, d] = weight[d, c, p]
        w_flat = jnp.transpose(self.weight, (2, 1, 0)).reshape(
            patch_size * c_in, d_model)
        # Pre-apply the output permutation (d = j*P + q -> column q*Dp + j) so
        # the kernel epilogue writes the final (B, P, T, Dp) layout directly.
        self.w_perm = (w_flat.reshape(-1, Dp, patch_size)
                       .transpose(0, 2, 1)
                       .reshape(patch_size * c_in, d_model)
                       .astype(compute_dtype))
        self.bias_perm = (self.bias.reshape(Dp, patch_size).T
                          .reshape(d_model).astype(jnp.float32))

    def __call__(self, x):
        # x: (B, L, c_in) float32
        B, L, C = x.shape
        assert C == self.c_in and L % self.patch_size == 0
        return _spatial_patch_emb_fwd(
            x, self.w_perm, self.bias_perm, self.patch_size,
            out_dtype=self.out_dtype,
            vmem_budget_bytes=self.vmem_budget_bytes)


# --------------------------------- main ---------------------------------------

if __name__ == "__main__":
    key = jax.random.PRNGKey(0)
    k_x, k_params = jax.random.split(key)

    B, L, c_in = 2, 16, 4
    d_model, patch_size = 32, 4

    emb = SpatialPatchEmb(c_in, d_model, patch_size, key=k_params)
    x = jax.random.normal(k_x, (B, L, c_in), dtype=jnp.float32)

    out = jax.block_until_ready(emb(x))
    assert out.shape == (B, L, d_model // patch_size)

    # Pure-JAX reference following the PyTorch op sequence literally
    # (same bf16 matmul operands + f32 accumulation as the kernel path).
    xb = x.astype(jnp.bfloat16).astype(jnp.float32)
    wb = emb.weight.astype(jnp.bfloat16).astype(jnp.float32)
    x_p = xb.reshape(B, L // patch_size, patch_size, c_in)
    conv_ref = jnp.einsum("btpc,dcp->btd", x_p, wb,
                          precision=jax.lax.Precision.HIGHEST) + emb.bias
    ref = jnp.transpose(
        jnp.transpose(conv_ref, (0, 2, 1)).reshape(B, d_model // patch_size, L),
        (0, 2, 1))
    assert jnp.allclose(out, ref, atol=1e-3, rtol=1e-3), \
        float(jnp.max(jnp.abs(out - ref)))

    print("KERNEL_OK")
</pallas_src>

<mosaic_0001>
module attributes {stable_mosaic.version = 11 : i64} {
  func.func @_patch_conv_kernel(%arg0: i32, %arg1: i32, %arg2: memref<1x4x16xf32, #tpu.memory_space<vmem>>, %arg3: memref<16x32xbf16, #tpu.memory_space<vmem>>, %arg4: memref<1x32xf32, #tpu.memory_space<vmem>>, %arg5: memref<1x4x4x8xf32, #tpu.memory_space<vmem>>) attributes {dimension_semantics = [#tpu.dimension_semantics<parallel>, #tpu.dimension_semantics<parallel>], iteration_bounds = array<i64: 2, 1>, scalar_prefetch = 0 : i64, scratch_operands = 0 : i64, tpu.core_type = #tpu.core_type<tc>, window_params = [{transform_indices = @transform_0, window_bounds = array<i64: 1, 4, 16>}, {pipeline_mode = #tpu.pipeline_mode<synchronous>, transform_indices = @transform_1, window_bounds = array<i64: 16, 32>}, {pipeline_mode = #tpu.pipeline_mode<synchronous>, transform_indices = @transform_2, window_bounds = array<i64: 1, 32>}, {transform_indices = @transform_3, window_bounds = array<i64: 1, 4, 4, 8>}]} {
    %c0 = arith.constant 0 : index
    %c0_0 = arith.constant 0 : index
    %c0_1 = arith.constant 0 : index
    %0 = vector.load %arg2[%c0, %c0_0, %c0_1] : memref<1x4x16xf32, #tpu.memory_space<vmem>>, vector<1x4x16xf32>
    %1 = vector.shape_cast %0 : vector<1x4x16xf32> to vector<4x16xf32>
    %2 = arith.truncf %1 : vector<4x16xf32> to vector<4x16xbf16>
    %c0_2 = arith.constant 0 : index
    %c0_3 = arith.constant 0 : index
    %3 = vector.load %arg3[%c0_2, %c0_3] : memref<16x32xbf16, #tpu.memory_space<vmem>>, vector<16x32xbf16>
    %cst = arith.constant dense<0.000000e+00> : vector<4x32xf32>
    %4 = tpu.matmul %2, %3, %cst {dimension_numbers = #tpu.dot_dimension_numbers<[1], [0], [0], [1], [0, 0, 1, 1], [], []>} : vector<4x16xbf16>, vector<16x32xbf16>, vector<4x32xf32> -> vector<4x32xf32>
    %c0_4 = arith.constant 0 : index
    %c0_5 = arith.constant 0 : index
    %5 = vector.load %arg4[%c0_4, %c0_5] : memref<1x32xf32, #tpu.memory_space<vmem>>, vector<1x32xf32>
    %6 = vector.broadcast %5 : vector<1x32xf32> to vector<4x32xf32>
    %7 = arith.addf %4, %6 : vector<4x32xf32>
    %8 = vector.extract_strided_slice %7 {offsets = [0, 0], sizes = [4, 8], strides = [1, 1]} : vector<4x32xf32> to vector<4x8xf32>
    %c0_6 = arith.constant 0 : index
    %c0_7 = arith.constant 0 : index
    %c0_8 = arith.constant 0 : index
    %c0_9 = arith.constant 0 : index
    %9 = vector.load %arg5[%c0_6, %c0_7, %c0_8, %c0_9] : memref<1x4x4x8xf32, #tpu.memory_space<vmem>>, vector<1x1x4x8xf32>
    %10 = vector.shape_cast %9 : vector<1x1x4x8xf32> to vector<4x8xf32>
    %11 = vector.shape_cast %8 : vector<4x8xf32> to vector<1x1x4x8xf32>
    tpu.vector_store %arg5[%c0_6, %c0_7, %c0_8, %c0_9], %11 {strides = array<i32>} : memref<1x4x4x8xf32, #tpu.memory_space<vmem>>, vector<1x1x4x8xf32>,
    %12 = vector.extract_strided_slice %7 {offsets = [0, 8], sizes = [4, 8], strides = [1, 1]} : vector<4x32xf32> to vector<4x8xf32>
    %c0_10 = arith.constant 0 : index
    %c1 = arith.constant 1 : index
    %c0_11 = arith.constant 0 : index
    %c0_12 = arith.constant 0 : index
    %13 = vector.load %arg5[%c0_10, %c1, %c0_11, %c0_12] : memref<1x4x4x8xf32, #tpu.memory_space<vmem>>, vector<1x1x4x8xf32>
    %14 = vector.shape_cast %13 : vector<1x1x4x8xf32> to vector<4x8xf32>
    %15 = vector.shape_cast %12 : vector<4x8xf32> to vector<1x1x4x8xf32>
    tpu.vector_store %arg5[%c0_10, %c1, %c0_11, %c0_12], %15 {strides = array<i32>} : memref<1x4x4x8xf32, #tpu.memory_space<vmem>>, vector<1x1x4x8xf32>,
    %16 = vector.extract_strided_slice %7 {offsets = [0, 16], sizes = [4, 8], strides = [1, 1]} : vector<4x32xf32> to vector<4x8xf32>
    %c0_13 = arith.constant 0 : index
    %c2 = arith.constant 2 : index
    %c0_14 = arith.constant 0 : index
    %c0_15 = arith.constant 0 : index
    %17 = vector.load %arg5[%c0_13, %c2, %c0_14, %c0_15] : memref<1x4x4x8xf32, #tpu.memory_space<vmem>>, vector<1x1x4x8xf32>
    %18 = vector.shape_cast %17 : vector<1x1x4x8xf32> to vector<4x8xf32>
    %19 = vector.shape_cast %16 : vector<4x8xf32> to vector<1x1x4x8xf32>
    tpu.vector_store %arg5[%c0_13, %c2, %c0_14, %c0_15], %19 {strides = array<i32>} : memref<1x4x4x8xf32, #tpu.memory_space<vmem>>, vector<1x1x4x8xf32>,
    %20 = vector.extract_strided_slice %7 {offsets = [0, 24], sizes = [4, 8], strides = [1, 1]} : vector<4x32xf32> to vector<4x8xf32>
    %c0_16 = arith.constant 0 : index
    %c3 = arith.constant 3 : index
    %c0_17 = arith.constant 0 : index
    %c0_18 = arith.constant 0 : index
    %21 = vector.load %arg5[%c0_16, %c3, %c0_17, %c0_18] : memref<1x4x4x8xf32, #tpu.memory_space<vmem>>, vector<1x1x4x8xf32>
    %22 = vector.shape_cast %21 : vector<1x1x4x8xf32> to vector<4x8xf32>
    %23 = vector.shape_cast %20 : vector<4x8xf32> to vector<1x1x4x8xf32>
    tpu.vector_store %arg5[%c0_16, %c3, %c0_17, %c0_18], %23 {strides = array<i32>} : memref<1x4x4x8xf32, #tpu.memory_space<vmem>>, vector<1x1x4x8xf32>,
    return
  }
  func.func @transform_0(%arg0: i32, %arg1: i32) -> (i32, i32, i32) {
    %c0_i32 = arith.constant 0 : i32
    %c0_i32_0 = arith.constant 0 : i32
    return %arg0, %arg1, %c0_i32 : i32, i32, i32
  }
  func.func @transform_1(%arg0: i32, %arg1: i32) -> (i32, i32) {
    %c0_i32 = arith.constant 0 : i32
    %c0_i32_0 = arith.constant 0 : i32
    %c0_i32_1 = arith.constant 0 : i32
    return %c0_i32, %c0_i32_0 : i32, i32
  }
  func.func @transform_2(%arg0: i32, %arg1: i32) -> (i32, i32) {
    %c0_i32 = arith.constant 0 : i32
    %c0_i32_0 = arith.constant 0 : i32
    %c0_i32_1 = arith.constant 0 : i32
    return %c0_i32, %c0_i32_0 : i32, i32
  }
  func.func @transform_3(%arg0: i32, %arg1: i32) -> (i32, i32, i32, i32) {
    %c0_i32 = arith.constant 0 : i32
    %c0_i32_0 = arith.constant 0 : i32
    %c0_i32_1 = arith.constant 0 : i32
    return %arg0, %c0_i32, %arg1, %c0_i32_0 : i32, i32, i32, i32
  }
}

</mosaic_0001>

<bundles_post_ra>
// kernel: tpu_custom_call.1
= control target key start
LH: loop header
LB: loop body
LE: loop exit
PB: predicated region body
PF: predicated region fallthrough
CT: control target
= control target key end

     0   :  { %8 = vsyncpa [#allocation3], 0  ;;  %s882_s0 = inlined_call_operand.hbm [shape: f32[2,4,16], index: 0, kind: input, shape index: {}]   ;;  %s883_s1 = inlined_call_operand.hbm [shape: bf16[16,32], index: 1, kind: input, shape index: {}]   ;;  %s884_s2 = inlined_call_operand.vmem [shape: f32[1,32], index: 2, kind: input, shape index: {}]   ;;  %s885_s3 = inlined_call_operand.hbm [shape: f32[2,4,4,8], index: 3, kind: output, shape index: {}]  }
   0x1   :  { %10 = vsyncpa [#allocation3 + $0x1], 0 }
   0x2   :  { %11 = vsyncpa [#allocation6], 0 }
   0x3   :  { %12 = vsyncpa [#allocation4], 0 }
   0x4   :  { %14 = vsyncpa [#allocation4 + $0x1], 0  ;;  %s693_s12 = smov 0   ;;  %s695_s13 = smov 0  }
   0x5   :  { %s697_s14 = smov 0   ;;  %s699_s15 = smov 0  }
   0x6   :  { %s701_s16 = smov 0   ;;  %s703_s17 = smov 0  }
   0x7 LB: > { %s407_s18 = sadd.s32 4294967295, %s659_s17   ;;  %s408_s19 = sadd.s32 4294967294, %s659_s17   ;;  %s659_s17 = sphi %s703_s17, %s20_s17   ;;  %s655_s16 = sphi %s701_s16, %s903_s16   ;;  %s651_s15 = sphi %s699_s15, %s902_s15   ;;  %s647_s14 = sphi %s697_s14, %s901_s14   ;;  %s643_s13 = sphi %s695_s13, %s900_s13   ;;  %s639_s12 = sphi %s693_s12, %s899_s12  }
   0x8   : > { %p54_p0 = scmp.ne.s32.totalorder %s643_s13, %s639_s12  ;;  %p727_p1 = scmp.eq.s32.totalorder %s407_s18, 0 }
   0x9   : > { %p731_p2 = scmp.eq.s32.totalorder %s407_s18, 1  ;;  %p128_p3 = scmp.eq.s32.totalorder %s408_s19, 1 }
   0xa   : > { %p737_p4 = por %p727_p1, %p54_p0  ;;  %p409_p5 = scmp.ge.s32.totalorder %s659_s17, 1 }
   0xb   : > { %p742_p6 = por %p128_p3, %p54_p0  ;;  %p135_p7 = scmp.lt.s32.totalorder %s659_s17, 3 }
   0xc   : > { %s889_s22 = scalar_select %p737_p4, 1, 0 }
   0xd   : > { %s890_s23 = scalar_select %p742_p6, 1, 0 }
   0xe   : > { %p747_p8 = pnand %p409_p5, %p135_p7  ;;  %s661_s25 = smov [#allocation5]  }
   0xf   : > { %s147_s26 = sshll.u32 %s661_s25, 4  ;;  %s32_s28 = sadd.s32 1, %s655_s16  ;;  %s148_s26 = int_to_ptr.vmem [resolvable:$true] %s147_s26 }
  0x10   : > { %p446_p9 = pneg %p747_p8  ;;  %s532_s29 = scalar_lea.vmem %s148_s26, 128 }
  0x11   : > { %p533_p13 = scmp.ne.s32.totalorder %s148_s26, %s532_s29  ;;  %p540_p5 = scmp.lt.s32.totalorder %s148_s26, %s148_s26 }
  0x12   : > { %p756_p11 = pnand %p446_p9, %p727_p1  ;;  %p541_p7 = scmp.lt.s32.totalorder %s532_s29, %s532_s29 }
  0x14   : > { %p523_p12 = pneg %p756_p11  ;;  %p542_p6 = por %p541_p7, %p540_p5 }
  0x16   : > { %p535_p0 = pnand %p533_p13, %p523_p12 }
  0x18   : > { %p536_p3 = pneg %p535_p0 }
  0x1a   : > { %p543_p4 = pnand %p542_p6, %p536_p3 }
  0x1c   : > { %546 = shalt.err (!%p543_p4)
}
  0x1d   : > { %s662_s30 = smov 64   ;;  %s663_s4 = smov 4  }
  0x1e   : > { %449 = dma.hbm_to_vmem [thread:$0]  (!%p756_p11), %s883_s1, 128, %s148_s26, [#allocation6], %s662_s30, %s662_s30, %s663_s4  }
  0x1f   : > { %p34_p6 = scmp.ge.s32.totalorder %s32_s28, 2  ;;  %s41_s7 = sadd.s32 1, %s647_s14 }
  0x20   : > { %p48_p4 = scmp.ne.s32.totalorder %s647_s14, %s643_s13  ;;  %p49_p9 = scmp.eq.s32.totalorder %s659_s17, 0 }
  0x21   : > { %s905_s28 = smov (%p34_p6, %s32_s28), 0  ;;  %p459_p0 = scmp.lt.s32.totalorder %s659_s17, 2 }
  0x22   : > { %p774_p12 = por %p49_p9, %p48_p4  ;;  %p780_p13 = por %p731_p2, %p48_p4 }
  0x23   : > { %s36_s10 = ssub.s32 %s655_s16, %s905_s28  ;;  %s164_s11 = sand.u32 1, %s647_s14  }
  0x24   : > { %p39_p11 = scmp.eq.s32.totalorder %s36_s10, 0  ;;  %s412_s18 = sshll.u32 %s164_s11, 2 }
  0x25   : > { %s413_s25 = sshll.u32 %s655_s16, 6  ;;  %s168_s30 = scalar_lea.vmem [#allocation2], %s412_s18 }
  0x26   : > { %s789_s19 = scalar_select %p39_p11, %s647_s14, %s41_s7  }
  0x27   : > { %s174_s29 = scalar_lea.hbm %s882_s0, %s413_s25  ;;  %s176_s4 = sshll.u32 %s168_s30, 4  ;;  %s177_s4 = int_to_ptr.vmem [resolvable:$true] %s176_s4 }
  0x28   : > { %p797_p2 = pnand %p459_p0, %p774_p12  ;;  %s165_s5 = scalar_lea.sflag [#allocation3], %s164_s11 }
  0x29   : > { %s560_s6 = scalar_lea.vmem %s177_s4, 64  ;;  %s664_s7 = smov [#allocation2]  }
  0x2a   : > { %p549_p3 = pneg %p797_p2  ;;  %p561_p5 = scmp.ne.s32.totalorder %s177_s4, %s560_s6 }
  0x2b   : > { %s565_s10 = sshll.u32 %s664_s7, 4  ;;  %s566_s10 = int_to_ptr.vmem [resolvable:$false] %s565_s10 }
  0x2c   : > { %p563_p7 = pnand %p561_p5, %p549_p3  ;;  %s567_s25 = scalar_lea.vmem %s566_s10, 128 }
  0x2d   : > { %p568_p4 = scmp.lt.s32.totalorder %s177_s4, %s566_s10  ;;  %p569_p9 = scmp.lt.s32.totalorder %s567_s25, %s560_s6 }
  0x2e   : > { %p564_p6 = pneg %p563_p7 }
  0x2f   : > { %p570_p11 = por %p569_p9, %p568_p4 }
  0x31   : > { %p571_p10 = pnand %p570_p11, %p564_p6 }
  0x33   : > { %574 = shalt.err (!%p571_p10)
}
  0x34   : > { %453 = dma.hbm_to_vmem [thread:$0]  (!%p797_p2), %s174_s29, 64, %s177_s4, %s165_s5  }
  0x35   : > { %185 = sbr.rel (%p747_p8) target bundleno = 394 (0x18a), region = 32  ;;  %s808_s8 = sand.u32 (!%p747_p8), 1, %s643_s13  }
  0x36   : > { %s415_s11 = sshll.u32 (!%p747_p8), %s808_s8, 2  ;;  %s188_s18 = scalar_lea.sflag (!%p747_p8), [#allocation3], %s808_s8 }
  0x37   : > { %s191_s26 = scalar_lea.vmem (!%p747_p8), [#allocation2], %s415_s11  ;;  %p896_p12 = scmp.ne.s32.totalorder (!%p747_p8), %s889_s22, 0 }
  0x3a   : > { %626 = dma.done.wait (%p896_p12), %s188_s18, 64  }
  0x3b   : > { %628 = vsyncadd (%p896_p12), %s188_s18, 4294967232 }
  0x3c   : > { %630 = dma.done.wait (%p727_p1), [#allocation6], 128  }
  0x3d   : > { %632 = vsyncadd (%p727_p1), [#allocation6], 4294967168  ;;  %v665_v0 = vmov 0.0   ;;  %vm666_vm0 = vmmov 0   ;;  %v520_v1 = vld [vmem:[#allocation5] sm:$0xff]   ;;  %vm236_vm1 = vcmask 130048  }
  0x3e   : > { %432 = vmatprep.subr.bf16.mxu0 %v665_v0  ;;  %434 = vmatprep.mubr.msk.bf16.mxu0 %vm666_vm0, %v665_v0  ;;  %v219_v2 = vld [vmem:[%s191_s26] sm:$0xf]  ;;  %s417_s24 = sshll.u32 %s808_s8, 4  ;;  %vm280_vm2 = vcmask 60416   ;;  %s667_s20 = smov 104  }
  0x3f   : > { %433 = vmatpush3.bf16.msra.mxu0 %v520_v1  ;;  %v220_v3 = vpack.c.bf16 %v219_v2, %v219_v2  ;;  %v418_v4 = vld [vmem:[%s884_s2] ss:$0 sm:$0xff]  ;;  %s668_s29 = smov 120   ;;  %s217_s30 = scalar_lea.vmem [#allocation7], %s417_s24 }
  0x40   : > { %s669_s4 = smov 112   ;;  %s313_s21 = sshll.u32 %s217_s30, 4  ;;  %s826_s21 = int_to_ptr.vmem [resolvable:$true] %s313_s21 }
  0x41   : > { %s429_s5 = sshll.u32 %s651_s15, 8  ;;  %s299_s15 = scalar_lea.sflag [#allocation4], %s808_s8 }
  0x42   : > { %435 = vmatmul.mubr.msk.bf16.vlgmr.msra.gmra.mxu0 %vm236_vm1, %v220_v3  ;;  %s833_s10 = scalar_lea.hbm %s885_s3, %s429_s5  ;;  %s575_s25 = scalar_lea.vmem %s826_s21, 256 }
  0x43   : > { %p576_p1 = scmp.ne.s32.totalorder %s826_s21, %s575_s25  ;;  %s670_s11 = smov [#allocation7]  }
  0x44   : > { %s579_s18 = sshll.u32 %s670_s11, 4  ;;  %s580_s18 = int_to_ptr.vmem [resolvable:$false] %s579_s18 }
  0x45   : > { %p577_p8 = pnand %p576_p1, %p780_p13  ;;  %s581_s26 = scalar_lea.vmem %s580_s18, 512 }
  0x46   : > { %p582_p0 = scmp.lt.s32.totalorder %s826_s21, %s580_s18  ;;  %p583_p2 = scmp.lt.s32.totalorder %s581_s26, %s575_s25 }
  0x47   : > { %p578_p10 = pneg %p577_p8 }
  0x48   : > { %p584_p3 = por %p583_p2, %p582_p0 }
  0x4a   : > { %p585_p5 = pnand %p584_p3, %p578_p10 }
 0x102   : > { %v274_v5 = vpop.f32.mrf.mxu0 }
 0x103   : > { %v275_v6 = vadd.f32 %v418_v4, %v274_v5 }
 0x104   : > { %v436_v7 = vpop.f32.mrf.mxu0 }
 0x105   : > { %293 = vrot.lane.b32.xlu1 %v275_v6, %s667_s20  ;;  %283 = vrot.lane.b32.xlu0 %v275_v6, %s668_s29  ;;  %281 = vst.msk [vmem:[%s217_s30] sm:$0xf] %vm280_vm2, %v275_v6 }
 0x106   : > { %v277_v8 = vpop.f32.mrf.mxu0 }
 0x108   : > { %v437_v9 = vpop.f32.mrf.mxu0 }
 0x109   : > { %288 = vrot.lane.b32.xlu0 %v275_v6, %s669_s4 }
 0x177   : > { %v294_v10 = vpop.permute.xlu1 %293  ;;  %v284_v11 = vpop.permute.xlu0 %283 }
 0x178   : > { %423 = vst.msk [vmem:[%s217_s30 + $0xc] sm:$0xf] %vm280_vm2, %v294_v10  ;;  %421 = vst.msk [vmem:[%s217_s30 + $0x4] sm:$0xf] %vm280_vm2, %v284_v11 }
 0x17b   : > { %v289_v12 = vpop.permute.xlu0 %288 }
 0x17c   : > { %422 = vst.msk [vmem:[%s217_s30 + $0x8] sm:$0xf] %vm280_vm2, %v289_v12 }
 0x17d   : > { %588 = shalt.err (!%p585_p5)
}
 0x17e   : > { %s589_s24 = scalar_lea.hbm %s833_s10, 256  ;;  %s593_s20 = scalar_lea.hbm %s885_s3, 512 }
 0x17f   : > { %p590_p7 = scmp.ne.s32.totalorder %s833_s10, %s589_s24  ;;  %p594_p9 = scmp.lt.s32.totalorder %s833_s10, %s885_s3 }
 0x180   : > { %p595_p11 = scmp.lt.s32.totalorder %s593_s20, %s589_s24 }
 0x181   : > { %p591_p6 = pnand %p590_p7, %p780_p13 }
 0x182   : > { %p596_p12 = por %p595_p11, %p594_p9 }
 0x183   : > { %p592_p4 = pneg %p591_p6 }
 0x185   : > { %p597_p1 = pnand %p596_p12, %p592_p4 }
 0x187   : > { %600 = shalt.err (!%p597_p1)
}
 0x188   : > { %s671_s4 = smov 64   ;;  %s672_s5 = smov 4  }
 0x189   : > { %444 = dma.vmem_to_hbm [thread:$0]  (%p780_p13), %s826_s21, 256, %s833_s10, %s299_s15, %s671_s4, %s671_s4, %s672_s5  }
 0x18a PF: > { %s328_s6 = sand.u32 1, %s639_s12   ;;  %p897_p8 = scmp.ne.s32.totalorder %s890_s23, 0 }
 0x18b   : > { %p898_p10 = scmp.ge.s32.totalorder %s659_s17, 2  ;;  %s329_s7 = scalar_lea.sflag [#allocation4], %s328_s6 }
 0x18d   : > { %p455_p0 = pnand %p898_p10, %p897_p8 }
 0x18f   : > { %p456_p2 = pneg %p455_p0 }
 0x191   : > { %634 = dma.done.wait (%p456_p2), %s329_s7, 256  }
 0x192   : > { %636 = vsyncadd (%p456_p2), %s329_s7, 4294967040  ;;  %s20_s17 = sadd.s32 1, %s659_s17   ;;  %s899_s12 = smov %s643_s13 }
 0x193   : > { %p17_p3 = scmp.ge.s32.totalorder %s20_s17, 4   ;;  %s900_s13 = smov %s647_s14 }
 0x194   : > { %s901_s14 = smov %s789_s19  ;;  %s902_s15 = smov %s655_s16 }
 0x195   : > { %s903_s16 = smov %s905_s28  ;;  %19 = sbr.rel (!%p17_p3) target bundleno = 7 (0x7), region = 84 }
 0x19a   :  { %334 = vsyncpa [#allocation3], 1 }
 0x19b   :  { %336 = vsyncpa [#allocation3 + $0x1], 1 }
 0x19c   :  { %337 = vsyncpa [#allocation6], 1 }
 0x19d   :  { %338 = vsyncpa [#allocation4], 1 }
 0x19e   :  { %340 = vsyncpa [#allocation4 + $0x1], 1 }

</bundles_post_ra>
